<compile_context>
chip_gen: v5e
topology: v5e:2x2
jax: 0.10.0
libtpu: 0.0.40
codegen_flags: <defaults>
</compile_context>

<pallas_src>
import jax
import jax.numpy as jnp
from jax.experimental import pallas as pl
from jax.experimental.pallas import tpu as pltpu

LANES = 128
# Per-input HBM bytes streamed per grid step (row count derived per dtype).
TILE_BYTES_PER_INPUT = 4 * 1024 * 1024
# Inputs whose (rows,128) slab fits comfortably in VMEM untiled take the
# single-step fast path (full reduction, incl. /n, inside the kernel).
SINGLE_TILE_MAX_ROWS = 4096
VMEM_LIMIT_BYTES = 48 * 1024 * 1024  # headroom under v7x's 64 MiB physical VMEM


def _huber_elementwise(x, t, delta):
    """Branch-free Huber: identical to the 0.5*e^2 / delta*(|e|-0.5*delta)
    two-branch form (both branches agree at |e| == delta)."""
    err = x - t
    abs_err = jnp.abs(err)
    m = jnp.minimum(abs_err, delta)
    return m * (abs_err - 0.5 * m)


def _grid_semantics():
    """CORE_PARALLEL on multi-TensorCore chips (v7x) so the tile axis is truly
    split across cores; plain "parallel" elsewhere (measured no-op on 1-TC)."""
    try:
        info = pltpu.get_tpu_info()
        for attr in ("num_cores", "num_tensor_cores", "tensorcores_per_chip",
                     "cores_per_chip"):
            n = getattr(info, attr, None)
            if n is not None and int(n) > 1:
                return (pltpu.CORE_PARALLEL,)
    except Exception:
        pass
    return ("parallel",)


def _make_single_tile_kernel(delta, n):
    delta = float(delta)

    def kernel(x_ref, t_ref, o_ref):
        loss = _huber_elementwise(x_ref[...].astype(jnp.float32),
                                  t_ref[...].astype(jnp.float32), delta)
        o_ref[0, 0] = jnp.sum(loss) / n

    return kernel


def _make_tiled_kernel(delta, rows, tile_rows, has_ragged_tail):
    delta = float(delta)

    def kernel(x_ref, t_ref, o_ref):
        i = pl.program_id(0)
        loss = _huber_elementwise(x_ref[...].astype(jnp.float32),
                                  t_ref[...].astype(jnp.float32), delta)

        def fold(v):
            # Sublane-aligned VPU fold into this tile's (8,128) partial slab.
            return v.reshape(tile_rows // 8, 8, LANES).sum(axis=0).reshape(o_ref.shape)

        if has_ragged_tail:
            # Only the last tile can overrun the (rows,128) slab; keep the
            # iota/compare/select out of the steady state.
            is_ragged = (i + 1) * tile_rows > rows

            @pl.when(is_ragged)
            def _():
                local_row = jax.lax.broadcasted_iota(jnp.int32, (tile_rows, LANES), 0)
                valid = (local_row + i * tile_rows) < rows
                o_ref[...] = fold(jnp.where(valid, loss, 0.0))

            @pl.when(jnp.logical_not(is_ragged))
            def _():
                o_ref[...] = fold(loss)
        else:
            o_ref[...] = fold(loss)

    return kernel


def huber_loss_pallas(x: jax.Array, target: jax.Array, delta: float = 1.0) -> jax.Array:
    """Exact equivalent of the PyTorch HuberLoss.forward (returns a scalar)."""
    assert x.shape == target.shape, "input/target shape mismatch"
    n = x.size

    # Free reshape to a lane-dense (rows, 128) slab in the native dtype.
    flat_x = x.reshape(-1)
    flat_t = target.reshape(-1)
    if n % LANES != 0:
        # Rare fallback: pad lanes.  Padded x == t == 0 -> zero loss, and we
        # always divide by the TRUE element count n.
        pad = LANES - (n % LANES)
        flat_x = jnp.pad(flat_x, (0, pad))
        flat_t = jnp.pad(flat_t, (0, pad))
    rows = flat_x.size // LANES
    x2 = flat_x.reshape(rows, LANES)
    t2 = flat_t.reshape(rows, LANES)

    # ---- Small-input fast path: one kernel, scalar SMEM output, /n in-kernel.
    if rows <= SINGLE_TILE_MAX_ROWS:
        out = pl.pallas_call(
            _make_single_tile_kernel(delta, n),
            out_shape=jax.ShapeDtypeStruct((1, 1), jnp.float32),
            in_specs=[pl.BlockSpec(memory_space=pltpu.MemorySpace.VMEM),
                      pl.BlockSpec(memory_space=pltpu.MemorySpace.VMEM)],
            out_specs=pl.BlockSpec(memory_space=pltpu.MemorySpace.SMEM),
            compiler_params=pltpu.CompilerParams(
                vmem_limit_bytes=VMEM_LIMIT_BYTES),
        )(x2, t2)
        return out[0, 0]

    # ---- Streaming path: dtype-aware lane-dense tiles, one independent
    # (8,128) f32 partial-sum slab per grid step.
    itemsize = jnp.dtype(x2.dtype).itemsize
    tile_rows = max(32, (TILE_BYTES_PER_INPUT // (LANES * itemsize)) // 32 * 32)
    # Don't use a tile much larger than the slab (limits masked garbage rows).
    tile_rows = min(tile_rows, ((rows + 31) // 32) * 32)
    num_tiles = pl.cdiv(rows, tile_rows)
    has_ragged_tail = (num_tiles * tile_rows) != rows

    partials = pl.pallas_call(
        _make_tiled_kernel(delta, rows, tile_rows, has_ragged_tail),
        out_shape=jax.ShapeDtypeStruct((num_tiles, 8, LANES), jnp.float32),
        grid_spec=pltpu.PrefetchScalarGridSpec(
            num_scalar_prefetch=0,
            grid=(num_tiles,),
            in_specs=[
                pl.BlockSpec((tile_rows, LANES), lambda i: (i, 0)),
                pl.BlockSpec((tile_rows, LANES), lambda i: (i, 0)),
            ],
            out_specs=pl.BlockSpec((1, 8, LANES), lambda i: (i, 0, 0)),
        ),
        compiler_params=pltpu.CompilerParams(
            dimension_semantics=_grid_semantics(),
            vmem_limit_bytes=VMEM_LIMIT_BYTES,
        ),
    )(x2, t2)

    # Tiny final reduction (num_tiles * 4 KiB) + mean division in the wrapper.
    return jnp.sum(partials) / n


def huber_loss_ref(x, target, delta=1.0):
    err = x.astype(jnp.float32) - target.astype(jnp.float32)
    abs_err = jnp.abs(err)
    small = 0.5 * err * err
    large = delta * (abs_err - 0.5 * delta)
    return jnp.mean(jnp.where(abs_err < delta, small, large))


if __name__ == "__main__":
    key = jax.random.PRNGKey(0)
    k1, k2, k3, k4, k5, k6 = jax.random.split(key, 6)

    # Small shape consistent with the CNN-LSTM regression setting (NCHW preds).
    x = jax.random.normal(k1, (2, 4, 16, 16), dtype=jnp.float32) * 2.0
    t = jax.random.normal(k2, (2, 4, 16, 16), dtype=jnp.float32) * 2.0
    loss = huber_loss_pallas(x, t, delta=1.0)
    jax.block_until_ready(loss)
    ref = huber_loss_ref(x, t, delta=1.0)
    assert jnp.allclose(loss, ref, rtol=1e-5, atol=1e-6), (loss, ref)

    # Medium: still the single-tile fast path, larger in-kernel reduce.
    xm = jax.random.normal(k3, (2, 4, 192, 192), dtype=jnp.float32) * 3.0
    tm = jax.random.normal(k4, (2, 4, 192, 192), dtype=jnp.float32) * 3.0
    loss_m = huber_loss_pallas(xm, tm, delta=1.0)
    jax.block_until_ready(loss_m)
    ref_m = huber_loss_ref(xm, tm, delta=1.0)
    assert jnp.allclose(loss_m, ref_m, rtol=5e-5, atol=1e-6), (loss_m, ref_m)

    # Large: exercises the streaming multi-tile path + ragged last tile mask.
    xl = jax.random.normal(k5, (4, 8, 192, 192), dtype=jnp.float32) * 3.0
    tl = jax.random.normal(k6, (4, 8, 192, 192), dtype=jnp.float32) * 3.0
    loss_l = huber_loss_pallas(xl, tl, delta=1.0)
    jax.block_until_ready(loss_l)
    ref_l = huber_loss_ref(xl, tl, delta=1.0)
    assert jnp.allclose(loss_l, ref_l, rtol=1e-4, atol=1e-6), (loss_l, ref_l)

    print("KERNEL_OK")
</pallas_src>

<mosaic_0001>
module attributes {stable_mosaic.version = 11 : i64} {
  func.func @kernel(%arg0: memref<16x128xf32, #tpu.memory_space<vmem>>, %arg1: memref<16x128xf32, #tpu.memory_space<vmem>>, %arg2: memref<1x1xf32, #tpu.memory_space<smem>>) attributes {dimension_semantics = [], scalar_prefetch = 0 : i64, scratch_operands = 0 : i64, tpu.core_type = #tpu.core_type<tc>} {
    %c0 = arith.constant 0 : index
    %c0_0 = arith.constant 0 : index
    %0 = vector.load %arg0[%c0, %c0_0] : memref<16x128xf32, #tpu.memory_space<vmem>>, vector<16x128xf32>
    %c0_1 = arith.constant 0 : index
    %c0_2 = arith.constant 0 : index
    %1 = vector.load %arg1[%c0_1, %c0_2] : memref<16x128xf32, #tpu.memory_space<vmem>>, vector<16x128xf32>
    %2 = arith.subf %0, %1 : vector<16x128xf32>
    %3 = math.absf %2 : vector<16x128xf32>
    %cst = arith.constant 1.000000e+00 : f32
    %4 = vector.broadcast %cst : f32 to vector<16x128xf32>
    %5 = arith.minimumf %3, %4 : vector<16x128xf32>
    %cst_3 = arith.constant 5.000000e-01 : f32
    %6 = vector.broadcast %cst_3 : f32 to vector<16x128xf32>
    %7 = arith.mulf %6, %5 : vector<16x128xf32>
    %8 = arith.subf %3, %7 : vector<16x128xf32>
    %9 = arith.mulf %5, %8 : vector<16x128xf32>
    %10 = vector.shape_cast %9 : vector<16x128xf32> to vector<1x16x128xf32>
    %cst_4 = arith.constant dense<0.000000e+00> : vector<1xf32>
    %11 = vector.multi_reduction <add>, %10, %cst_4 [1, 2] : vector<1x16x128xf32> to vector<1xf32>
    %12 = vector.shape_cast %11 : vector<1xf32> to vector<1x1x1xf32>
    %13 = vector.extract %12[0, 0, 0] : f32 from vector<1x1x1xf32>
    %cst_5 = arith.constant 2.048000e+03 : f32
    %14 = arith.divf %13, %cst_5 : f32
    %c0_6 = arith.constant 0 : index
    %c0_7 = arith.constant 0 : index
    %15 = memref.load %arg2[%c0_6, %c0_7] : memref<1x1xf32, #tpu.memory_space<smem>>
    memref.store %14, %arg2[%c0_6, %c0_7] : memref<1x1xf32, #tpu.memory_space<smem>>
    return
  }
}

</mosaic_0001>

<bundles_post_ra>
// kernel: tpu_custom_call.1
= control target key start
LH: loop header
LB: loop body
LE: loop exit
PB: predicated region body
PF: predicated region fallthrough
CT: control target
= control target key end

     0   :  { %7 = vsyncpa [#allocation3], 0  ;;  %s206_s0 = inlined_call_operand.hbm [shape: f32[16,128], index: 0, kind: input, shape index: {}]   ;;  %s207_s1 = inlined_call_operand.hbm [shape: f32[16,128], index: 1, kind: input, shape index: {}]   ;;  %s208_s2 = inlined_call_operand.hbm [shape: f32[1,1], index: 2, kind: output, shape index: {}]  }
   0x1   :  { %8 = vsyncpa [#allocation6], 0 }
   0x2   :  { %9 = vsyncpa [#allocation4], 0  ;;  %s14_s11 = sshll.u32 %s206_s0, 4  ;;  %s176_s12 = smov [#allocation2]   ;;  %s15_s11 = int_to_ptr.hbm [resolvable:$true] %s14_s11 }
   0x3   :  { %s16_s13 = sshll.u32 %s176_s12, 4  ;;  %s27_s16 = sshll.u32 %s207_s1, 4  ;;  %s17_s13 = int_to_ptr.vmem [resolvable:$true] %s16_s13  ;;  %s28_s16 = int_to_ptr.hbm [resolvable:$true] %s27_s16 }
   0x4   :  { %s177_s17 = smov 128   ;;  %s178_s18 = smov 8  }
   0x5   :  { %22 = dma.hbm_to_vmem [thread:$0]  %s15_s11, 256, %s17_s13, [#allocation3], %s177_s17, %s177_s17, %s178_s18  }
   0x6   :  { %s179_s19 = smov [#allocation5]  }
   0x7   :  { %s29_s20 = sshll.u32 %s179_s19, 4  ;;  %s30_s20 = int_to_ptr.vmem [resolvable:$true] %s29_s20 }
   0x8   :  { %35 = dma.hbm_to_vmem [thread:$0]  %s28_s16, 256, %s30_s20, [#allocation6], %s177_s17, %s177_s17, %s178_s18  }
   0x9   :  { %170 = dma.done.wait [#allocation3], 256  }
   0xa   :  { %171 = vsyncadd [#allocation3], 4294967040 }
   0xb   :  { %172 = dma.done.wait [#allocation6], 256  }
   0xc   :  { %173 = vsyncadd [#allocation6], 4294967040  ;;  %v44_v0 = vld [vmem:[#allocation2] sm:$0xff]  ;;  %v45_v1 = vld [vmem:[#allocation2 + $0x8] sm:$0xff]  ;;  %v180_v17 = vmov 2048.0   ;;  %s86_s21 = sshll.u32 %s208_s2, 4  ;;  %s87_s21 = int_to_ptr.hbm [resolvable:$true] %s86_s21 }
   0xd   :  { %v46_v2 = vld [vmem:[#allocation5] sm:$0xff]  ;;  %v47_v3 = vld [vmem:[#allocation5 + $0x8] sm:$0xff]  ;;  %108 = vrcp.f32 %v180_v17  ;;  %s181_s25 = smov [#allocation7]  }
   0xe   :  { %v48_v4 = vsub.f32 %v44_v0, %v46_v2  ;;  %v49_v5 = vsub.f32 %v45_v1, %v47_v3 }
  0x10   :  { %v50_v6 = vand.u32 2147483647, %v48_v4  ;;  %v51_v7 = vand.u32 2147483647, %v49_v5 }
  0x12   :  { %v52_v8 = vmin.f32 %v50_v6, 1.0  ;;  %v53_v9 = vmin.f32 %v51_v7, 1.0 }
  0x13   :  { %v109_v18 = vpop.eup %108 }
  0x14   :  { %v54_v10 = vmul.f32 0.5, %v52_v8  ;;  %v55_v11 = vmul.f32 0.5, %v53_v9  ;;  %v71_v19 = vmul.f32 2048.0, %v109_v18  ;;  %vm75_vm0 = vweird.f32 %v109_v18 }
  0x16   :  { %v56_v12 = vsub.f32 %v50_v6, %v54_v10  ;;  %v57_v13 = vsub.f32 %v51_v7, %v55_v11  ;;  %v72_v20 = vsub.f32 1.0, %v71_v19 }
  0x18   :  { %v58_v14 = vmul.f32 %v56_v12, %v52_v8  ;;  %v59_v15 = vmul.f32 %v57_v13, %v53_v9  ;;  %v73_v24 = vmul.f32 %v109_v18, %v72_v20 }
  0x1a   :  { %v60_v16 = vadd.f32 %v59_v15, %v58_v14  ;;  %v74_v27 = vadd.f32 %v109_v18, %v73_v24 }
  0x1c   :  { %61 = vadd.xlane.f32.xlu0 %v60_v16  ;;  %v76_v30 = vsel %vm75_vm0, %v109_v18, %v74_v27 }
  0x8f   :  { %v62_v21 = vpop.xlane.xlu0 %61 }
  0x90   :  { %v63_v22 = vrot.slane %v62_v21, 4 }
  0x92   :  { %v64_v23 = vadd.f32 %v63_v22, %v62_v21 }
  0x94   :  { %v65_v25 = vrot.slane %v64_v23, 2 }
  0x96   :  { %v66_v26 = vadd.f32 %v65_v25, %v64_v23 }
  0x98   :  { %v67_v28 = vrot.slane %v66_v26, 1 }
  0x9a   :  { %v68_v29 = vadd.f32 %v67_v28, %v66_v26 }
  0x9c   :  { %98 = vpush %v68_v29 }
  0x9d   :  { %100 = vpush %v76_v30 }
  0xcd   :  { %s99_s22 = spop %98 }
  0xce   :  { %s101_s23 = spop %100 }
  0xcf   :  { %s78_s24 = smul.f32 %s101_s23, %s99_s22 }
  0xd1   :  { %80 = sst [smem:[#allocation7]] %s78_s24 }
  0xd2   :  { %89 = dma.smem_to_hbm %s181_s25, 16, %s87_s21, [#allocation4]  }
  0xd3   :  { %174 = dma.done.wait [#allocation4], 16  }
  0xd4   :  { %175 = vsyncadd [#allocation4], 4294967280 }
  0xd5   :  { %94 = sfence }
  0xd6   :  { %95 = vsyncpa [#allocation3], 1 }
  0xd7   :  { %96 = vsyncpa [#allocation6], 1 }
  0xd8   :  { %97 = vsyncpa [#allocation4], 1 }

</bundles_post_ra>
